<compile_context>
chip_gen: v5e
topology: v5e:2x2
jax: 0.10.0
libtpu: 0.0.40
codegen_flags: <defaults>
</compile_context>

<pallas_src>
import jax
import jax.numpy as jnp
import numpy as np
from jax.experimental import pallas as pl
from jax.experimental.pallas import tpu as pltpu  # noqa: F401  (TPU backend)

# ---- problem sizes implied by the module ------------------------------------
B = 2          # batch
C = 4          # n_channels
H = 32         # n_hidden
K = 3          # kernel_size
L = 48         # sequence length (forced by the 24 * n_hidden flatten)
LP = L // 2    # pooled length = 24
O = 1          # output_size (nn.Linear(24*n_hidden, 1)); kernel assumes O == 1


def _cnn_kernel(x_ref, wtap_ref, bconv_ref, wfc_ref, sel_ref, bfc_ref, o_ref):
    """Fused conv1d(+bias) -> relu -> maxpool(2) -> linear(+bias).

    x_ref    : (B, C, L+2)   zero-padded input (NCW)
    wtap_ref : (K, H, C)     conv weight, tap-major (each tap a clean MXU LHS)
    bconv_ref: (B*H, 1)      conv bias tiled per batch row-block
    wfc_ref  : (B*H, L-1)    fc weight, expanded: even lanes carry the weight
                             for pooled step s at lane 2s, odd lanes are 0
    sel_ref  : (B, B*H)      per-batch row-selection matrix (segment sum)
    bfc_ref  : (1, O)        fc bias
    o_ref    : (B, O)
    """
    # ---- conv1d as K shifted-slice MXU matmuls, per batch (B=2, unrolled) ----
    convs = []
    for b in range(B):
        x_b = x_ref[b]                                          # (C, L+2)
        acc = jnp.dot(wtap_ref[0], x_b[:, 0:L],
                      preferred_element_type=jnp.float32)       # (H, L)
        for k in range(1, K):
            acc = acc + jnp.dot(wtap_ref[k], x_b[:, k:k + L],
                                preferred_element_type=jnp.float32)
        convs.append(acc)
    # Stack batches along sublanes at an 8-aligned offset (32) -> (B*H, L).
    conv_all = jnp.concatenate(convs, axis=0)

    # ---- bias + relu (bias broadcast along lanes; cheap VPU add) -------------
    act = jnp.maximum(conv_all + bconv_ref[...], 0.0)           # (B*H, L)

    # ---- max_pool1d(2): two CONTIGUOUS lane slices, no strided access --------
    # pm[:, 2s] = max(act[:, 2s], act[:, 2s+1]) = pooled value; odd lanes are
    # garbage and get zero weight in the expanded fc weight below.
    pm = jnp.maximum(act[:, :L - 1], act[:, 1:])                # (B*H, L-1)

    # ---- fc1, flat 2-D: multiply, per-batch segment sum on MXU, lane reduce --
    prod = pm * wfc_ref[...]                                    # (B*H, L-1)
    seg = jnp.dot(sel_ref[...], prod,
                  preferred_element_type=jnp.float32)           # (B, L-1)
    y = jnp.sum(seg, axis=1, keepdims=True)                     # (B, 1) == (B, O)
    o_ref[...] = y + bfc_ref[...]


def prepare_params(w_conv, b_conv, w_fc, b_fc):
    """One-time (parameter-load) re-layout of the static weights.

    Hoisted out of the per-call path so the jitted forward only pads x and
    calls the kernel.
    """
    assert w_fc.shape == (O, LP * H)
    # conv weight (H, C, K) -> tap-major (K, H, C).
    w_taps = jnp.transpose(w_conv, (2, 0, 1)).astype(jnp.float32)     # (K, H, C)
    # conv bias tiled over the stacked (B*H, L) activation slab.
    b_conv_t = jnp.tile(b_conv.reshape(H, 1), (B, 1)).astype(jnp.float32)  # (B*H, 1)
    # fc weight: PyTorch flatten order is h*LP + s.  Expand along the
    # un-compacted pooled lane axis (length L-1): lane 2s carries
    # w_fc[0, h*LP + s], odd lanes are zero (O == 1).
    wfc_r = w_fc.reshape(O, H, LP)                                    # (O, H, LP)
    wfc_x = jnp.zeros((H, L - 1), jnp.float32).at[:, 0::2].set(wfc_r[0])
    wfc_t = jnp.tile(wfc_x, (B, 1))                                   # (B*H, L-1)
    # per-batch selection matrix for the segment sum over each batch's H rows.
    sel = jnp.asarray(
        (np.arange(B * H) // H)[None, :] == np.arange(B)[:, None],
        jnp.float32)                                                  # (B, B*H)
    b_fc_r = b_fc.reshape(1, O).astype(jnp.float32)                   # (1, O)
    return w_taps, b_conv_t, wfc_t, sel, b_fc_r


@jax.jit
def cnn_forward(x, w_taps, b_conv_t, wfc_t, sel, b_fc_r):
    """x: (B, C, L) float32 (NCW, like PyTorch Conv1d input)."""
    # Only per-call prep: zero-pad the time axis for the 'same' conv.
    x_pad = jnp.pad(x, ((0, 0), (0, 0), (1, 1)))                # (B, C, L+2)

    # grid=(1,): the whole problem (~20 KB) fits one VMEM-resident step.
    # If B ever grows, tile the grid over batch (multiples of 8 rows) and mark
    # it "parallel" so v7x's second TensorCore is used.
    out = pl.pallas_call(
        _cnn_kernel,
        out_shape=jax.ShapeDtypeStruct((B, O), jnp.float32),
        grid=(1,),
        in_specs=[
            pl.BlockSpec((B, C, L + 2), lambda i: (0, 0, 0)),
            pl.BlockSpec((K, H, C), lambda i: (0, 0, 0)),
            pl.BlockSpec((B * H, 1), lambda i: (0, 0)),
            pl.BlockSpec((B * H, L - 1), lambda i: (0, 0)),
            pl.BlockSpec((B, B * H), lambda i: (0, 0)),
            pl.BlockSpec((1, O), lambda i: (0, 0)),
        ],
        out_specs=pl.BlockSpec((B, O), lambda i: (0, 0)),
    )(x_pad, w_taps, b_conv_t, wfc_t, sel, b_fc_r)
    return out


def reference(x, w_conv, b_conv, w_fc, b_fc):
    """Pure-JAX reference mirroring the PyTorch forward."""
    out = jax.lax.conv_general_dilated(
        x, w_conv, window_strides=(1,), padding=((1, 1),),
        dimension_numbers=("NCH", "OIH", "NCH"))
    out = out + b_conv[None, :, None]
    out = jnp.maximum(out, 0.0)
    out = jnp.max(out.reshape(B, H, LP, 2), axis=-1)      # max_pool1d(2)
    flat = out.reshape(B, -1)                             # (B, H*LP), h*LP + s order
    return flat @ w_fc.T + b_fc


if __name__ == "__main__":
    key = jax.random.PRNGKey(0)
    k1, k2, k3, k4, k5 = jax.random.split(key, 5)

    # Deterministic synthetic parameters (shapes match nn.Conv1d / nn.Linear).
    w_conv = jax.random.normal(k1, (H, C, K), jnp.float32) * 0.1
    b_conv = jax.random.normal(k2, (H,), jnp.float32) * 0.1
    w_fc = jax.random.normal(k3, (O, LP * H), jnp.float32) * 0.05
    b_fc = jax.random.normal(k4, (O,), jnp.float32) * 0.1

    x = jax.random.normal(k5, (B, C, L), jnp.float32)

    # Static weight re-layouts: done once, outside the per-call path.
    params = prepare_params(w_conv, b_conv, w_fc, b_fc)

    y = cnn_forward(x, *params)
    jax.block_until_ready(y)

    y_ref = reference(x, w_conv, b_conv, w_fc, b_fc)
    np.testing.assert_allclose(np.asarray(y), np.asarray(y_ref),
                               rtol=1e-4, atol=1e-4)
    print("KERNEL_OK")
</pallas_src>

<mosaic_0001>
module attributes {stable_mosaic.version = 11 : i64} {
  func.func @_cnn_kernel(%arg0: i32, %arg1: memref<2x4x50xf32, #tpu.memory_space<vmem>>, %arg2: memref<3x32x4xf32, #tpu.memory_space<vmem>>, %arg3: memref<64x1xf32, #tpu.memory_space<vmem>>, %arg4: memref<64x47xf32, #tpu.memory_space<vmem>>, %arg5: memref<2x64xf32, #tpu.memory_space<vmem>>, %arg6: memref<1x1xf32, #tpu.memory_space<vmem>>, %arg7: memref<2x1xf32, #tpu.memory_space<vmem>>) attributes {dimension_semantics = [#tpu.dimension_semantics<arbitrary>], iteration_bounds = array<i64: 1>, scalar_prefetch = 0 : i64, scratch_operands = 0 : i64, tpu.core_type = #tpu.core_type<tc>, window_params = [{pipeline_mode = #tpu.pipeline_mode<synchronous>, transform_indices = @transform_0, window_bounds = array<i64: 2, 4, 50>}, {pipeline_mode = #tpu.pipeline_mode<synchronous>, transform_indices = @transform_1, window_bounds = array<i64: 3, 32, 4>}, {pipeline_mode = #tpu.pipeline_mode<synchronous>, transform_indices = @transform_2, window_bounds = array<i64: 64, 1>}, {pipeline_mode = #tpu.pipeline_mode<synchronous>, transform_indices = @transform_3, window_bounds = array<i64: 64, 47>}, {pipeline_mode = #tpu.pipeline_mode<synchronous>, transform_indices = @transform_4, window_bounds = array<i64: 2, 64>}, {pipeline_mode = #tpu.pipeline_mode<synchronous>, transform_indices = @transform_5, window_bounds = array<i64: 1, 1>}, {pipeline_mode = #tpu.pipeline_mode<synchronous>, transform_indices = @transform_6, window_bounds = array<i64: 2, 1>}]} {
    %c0 = arith.constant 0 : index
    %c0_0 = arith.constant 0 : index
    %c0_1 = arith.constant 0 : index
    %0 = vector.load %arg1[%c0, %c0_0, %c0_1] : memref<2x4x50xf32, #tpu.memory_space<vmem>>, vector<1x4x50xf32>
    %1 = vector.shape_cast %0 : vector<1x4x50xf32> to vector<4x50xf32>
    %c0_2 = arith.constant 0 : index
    %c0_3 = arith.constant 0 : index
    %c0_4 = arith.constant 0 : index
    %2 = vector.load %arg2[%c0_2, %c0_3, %c0_4] : memref<3x32x4xf32, #tpu.memory_space<vmem>>, vector<1x32x4xf32>
    %3 = vector.shape_cast %2 : vector<1x32x4xf32> to vector<32x4xf32>
    %4 = vector.extract_strided_slice %1 {offsets = [0, 0], sizes = [4, 48], strides = [1, 1]} : vector<4x50xf32> to vector<4x48xf32>
    %cst = arith.constant dense<0.000000e+00> : vector<32x48xf32>
    %5 = tpu.matmul %3, %4, %cst {dimension_numbers = #tpu.dot_dimension_numbers<[1], [0], [0], [1], [0, 0, 1, 1], [], []>} : vector<32x4xf32>, vector<4x48xf32>, vector<32x48xf32> -> vector<32x48xf32>
    %c1 = arith.constant 1 : index
    %c0_5 = arith.constant 0 : index
    %c0_6 = arith.constant 0 : index
    %6 = vector.load %arg2[%c1, %c0_5, %c0_6] : memref<3x32x4xf32, #tpu.memory_space<vmem>>, vector<1x32x4xf32>
    %7 = vector.shape_cast %6 : vector<1x32x4xf32> to vector<32x4xf32>
    %8 = vector.extract_strided_slice %1 {offsets = [0, 1], sizes = [4, 48], strides = [1, 1]} : vector<4x50xf32> to vector<4x48xf32>
    %cst_7 = arith.constant dense<0.000000e+00> : vector<32x48xf32>
    %9 = tpu.matmul %7, %8, %cst_7 {dimension_numbers = #tpu.dot_dimension_numbers<[1], [0], [0], [1], [0, 0, 1, 1], [], []>} : vector<32x4xf32>, vector<4x48xf32>, vector<32x48xf32> -> vector<32x48xf32>
    %10 = arith.addf %5, %9 : vector<32x48xf32>
    %c2 = arith.constant 2 : index
    %c0_8 = arith.constant 0 : index
    %c0_9 = arith.constant 0 : index
    %11 = vector.load %arg2[%c2, %c0_8, %c0_9] : memref<3x32x4xf32, #tpu.memory_space<vmem>>, vector<1x32x4xf32>
    %12 = vector.shape_cast %11 : vector<1x32x4xf32> to vector<32x4xf32>
    %13 = vector.extract_strided_slice %1 {offsets = [0, 2], sizes = [4, 48], strides = [1, 1]} : vector<4x50xf32> to vector<4x48xf32>
    %cst_10 = arith.constant dense<0.000000e+00> : vector<32x48xf32>
    %14 = tpu.matmul %12, %13, %cst_10 {dimension_numbers = #tpu.dot_dimension_numbers<[1], [0], [0], [1], [0, 0, 1, 1], [], []>} : vector<32x4xf32>, vector<4x48xf32>, vector<32x48xf32> -> vector<32x48xf32>
    %15 = arith.addf %10, %14 : vector<32x48xf32>
    %c1_11 = arith.constant 1 : index
    %c0_12 = arith.constant 0 : index
    %c0_13 = arith.constant 0 : index
    %16 = vector.load %arg1[%c1_11, %c0_12, %c0_13] : memref<2x4x50xf32, #tpu.memory_space<vmem>>, vector<1x4x50xf32>
    %17 = vector.shape_cast %16 : vector<1x4x50xf32> to vector<4x50xf32>
    %c0_14 = arith.constant 0 : index
    %c0_15 = arith.constant 0 : index
    %c0_16 = arith.constant 0 : index
    %18 = vector.load %arg2[%c0_14, %c0_15, %c0_16] : memref<3x32x4xf32, #tpu.memory_space<vmem>>, vector<1x32x4xf32>
    %19 = vector.shape_cast %18 : vector<1x32x4xf32> to vector<32x4xf32>
    %20 = vector.extract_strided_slice %17 {offsets = [0, 0], sizes = [4, 48], strides = [1, 1]} : vector<4x50xf32> to vector<4x48xf32>
    %cst_17 = arith.constant dense<0.000000e+00> : vector<32x48xf32>
    %21 = tpu.matmul %19, %20, %cst_17 {dimension_numbers = #tpu.dot_dimension_numbers<[1], [0], [0], [1], [0, 0, 1, 1], [], []>} : vector<32x4xf32>, vector<4x48xf32>, vector<32x48xf32> -> vector<32x48xf32>
    %c1_18 = arith.constant 1 : index
    %c0_19 = arith.constant 0 : index
    %c0_20 = arith.constant 0 : index
    %22 = vector.load %arg2[%c1_18, %c0_19, %c0_20] : memref<3x32x4xf32, #tpu.memory_space<vmem>>, vector<1x32x4xf32>
    %23 = vector.shape_cast %22 : vector<1x32x4xf32> to vector<32x4xf32>
    %24 = vector.extract_strided_slice %17 {offsets = [0, 1], sizes = [4, 48], strides = [1, 1]} : vector<4x50xf32> to vector<4x48xf32>
    %cst_21 = arith.constant dense<0.000000e+00> : vector<32x48xf32>
    %25 = tpu.matmul %23, %24, %cst_21 {dimension_numbers = #tpu.dot_dimension_numbers<[1], [0], [0], [1], [0, 0, 1, 1], [], []>} : vector<32x4xf32>, vector<4x48xf32>, vector<32x48xf32> -> vector<32x48xf32>
    %26 = arith.addf %21, %25 : vector<32x48xf32>
    %c2_22 = arith.constant 2 : index
    %c0_23 = arith.constant 0 : index
    %c0_24 = arith.constant 0 : index
    %27 = vector.load %arg2[%c2_22, %c0_23, %c0_24] : memref<3x32x4xf32, #tpu.memory_space<vmem>>, vector<1x32x4xf32>
    %28 = vector.shape_cast %27 : vector<1x32x4xf32> to vector<32x4xf32>
    %29 = vector.extract_strided_slice %17 {offsets = [0, 2], sizes = [4, 48], strides = [1, 1]} : vector<4x50xf32> to vector<4x48xf32>
    %cst_25 = arith.constant dense<0.000000e+00> : vector<32x48xf32>
    %30 = tpu.matmul %28, %29, %cst_25 {dimension_numbers = #tpu.dot_dimension_numbers<[1], [0], [0], [1], [0, 0, 1, 1], [], []>} : vector<32x4xf32>, vector<4x48xf32>, vector<32x48xf32> -> vector<32x48xf32>
    %31 = arith.addf %26, %30 : vector<32x48xf32>
    %32 = tpu.concatenate %15, %31 in 0 : vector<32x48xf32>, vector<32x48xf32> -> vector<64x48xf32>
    %c0_26 = arith.constant 0 : index
    %c0_27 = arith.constant 0 : index
    %33 = vector.load %arg3[%c0_26, %c0_27] : memref<64x1xf32, #tpu.memory_space<vmem>>, vector<64x1xf32>
    %34 = vector.broadcast %33 : vector<64x1xf32> to vector<64x48xf32>
    %35 = arith.addf %32, %34 : vector<64x48xf32>
    %cst_28 = arith.constant 0.000000e+00 : f32
    %36 = vector.broadcast %cst_28 : f32 to vector<64x48xf32>
    %37 = arith.maximumf %35, %36 : vector<64x48xf32>
    %38 = vector.extract_strided_slice %37 {offsets = [0, 0], sizes = [64, 47], strides = [1, 1]} : vector<64x48xf32> to vector<64x47xf32>
    %39 = vector.extract_strided_slice %37 {offsets = [0, 1], sizes = [64, 47], strides = [1, 1]} : vector<64x48xf32> to vector<64x47xf32>
    %40 = arith.maximumf %38, %39 : vector<64x47xf32>
    %c0_29 = arith.constant 0 : index
    %c0_30 = arith.constant 0 : index
    %41 = vector.load %arg4[%c0_29, %c0_30] : memref<64x47xf32, #tpu.memory_space<vmem>>, vector<64x47xf32>
    %42 = arith.mulf %40, %41 : vector<64x47xf32>
    %c0_31 = arith.constant 0 : index
    %c0_32 = arith.constant 0 : index
    %43 = vector.load %arg5[%c0_31, %c0_32] : memref<2x64xf32, #tpu.memory_space<vmem>>, vector<2x64xf32>
    %cst_33 = arith.constant dense<0.000000e+00> : vector<2x47xf32>
    %44 = tpu.matmul %43, %42, %cst_33 {dimension_numbers = #tpu.dot_dimension_numbers<[1], [0], [0], [1], [0, 0, 1, 1], [], []>} : vector<2x64xf32>, vector<64x47xf32>, vector<2x47xf32> -> vector<2x47xf32>
    %cst_34 = arith.constant dense<0.000000e+00> : vector<2xf32>
    %45 = vector.multi_reduction <add>, %44, %cst_34 [1] : vector<2x47xf32> to vector<2xf32>
    %46 = vector.shape_cast %45 : vector<2xf32> to vector<2x1xf32>
    %c0_35 = arith.constant 0 : index
    %c0_36 = arith.constant 0 : index
    %47 = vector.load %arg6[%c0_35, %c0_36] : memref<1x1xf32, #tpu.memory_space<vmem>>, vector<1x1xf32>
    %48 = vector.broadcast %47 : vector<1x1xf32> to vector<2x1xf32>
    %49 = arith.addf %46, %48 : vector<2x1xf32>
    %c0_37 = arith.constant 0 : index
    %c0_38 = arith.constant 0 : index
    %50 = vector.load %arg7[%c0_37, %c0_38] : memref<2x1xf32, #tpu.memory_space<vmem>>, vector<2x1xf32>
    tpu.vector_store %arg7[%c0_37, %c0_38], %49 {strides = array<i32>} : memref<2x1xf32, #tpu.memory_space<vmem>>, vector<2x1xf32>,
    return
  }
  func.func @transform_0(%arg0: i32) -> (i32, i32, i32) {
    %c0_i32 = arith.constant 0 : i32
    %c0_i32_0 = arith.constant 0 : i32
    %c0_i32_1 = arith.constant 0 : i32
    %c0_i32_2 = arith.constant 0 : i32
    return %c0_i32, %c0_i32_0, %c0_i32_1 : i32, i32, i32
  }
  func.func @transform_1(%arg0: i32) -> (i32, i32, i32) {
    %c0_i32 = arith.constant 0 : i32
    %c0_i32_0 = arith.constant 0 : i32
    %c0_i32_1 = arith.constant 0 : i32
    %c0_i32_2 = arith.constant 0 : i32
    return %c0_i32, %c0_i32_0, %c0_i32_1 : i32, i32, i32
  }
  func.func @transform_2(%arg0: i32) -> (i32, i32) {
    %c0_i32 = arith.constant 0 : i32
    %c0_i32_0 = arith.constant 0 : i32
    %c0_i32_1 = arith.constant 0 : i32
    return %c0_i32, %c0_i32_0 : i32, i32
  }
  func.func @transform_3(%arg0: i32) -> (i32, i32) {
    %c0_i32 = arith.constant 0 : i32
    %c0_i32_0 = arith.constant 0 : i32
    %c0_i32_1 = arith.constant 0 : i32
    return %c0_i32, %c0_i32_0 : i32, i32
  }
  func.func @transform_4(%arg0: i32) -> (i32, i32) {
    %c0_i32 = arith.constant 0 : i32
    %c0_i32_0 = arith.constant 0 : i32
    %c0_i32_1 = arith.constant 0 : i32
    return %c0_i32, %c0_i32_0 : i32, i32
  }
  func.func @transform_5(%arg0: i32) -> (i32, i32) {
    %c0_i32 = arith.constant 0 : i32
    %c0_i32_0 = arith.constant 0 : i32
    %c0_i32_1 = arith.constant 0 : i32
    return %c0_i32, %c0_i32_0 : i32, i32
  }
  func.func @transform_6(%arg0: i32) -> (i32, i32) {
    %c0_i32 = arith.constant 0 : i32
    %c0_i32_0 = arith.constant 0 : i32
    %c0_i32_1 = arith.constant 0 : i32
    return %c0_i32, %c0_i32_0 : i32, i32
  }
}

</mosaic_0001>

<bundles_post_ra>
// kernel: cnn_forward.1
= control target key start
LH: loop header
LB: loop body
LE: loop exit
PB: predicated region body
PF: predicated region fallthrough
CT: control target
= control target key end

     0   :  { %s493_s25 = smov 126   ;;  %s494_s26 = smov 127   ;;  %vm51_vm0 = vcmask 1043456   ;;  %vm38_vm1 = vcmask 31744   ;;  %v495_v5 = vmov 0   ;;  %vm405_vm2 = vcmask 523264   ;;  %s675_s0 = inlined_call_operand.vmem [shape: f32[2,4,50], index: 0, kind: input, shape index: {}]   ;;  %s676_s1 = inlined_call_operand.vmem [shape: f32[3,32,4], index: 1, kind: input, shape index: {}]   ;;  %s677_s2 = inlined_call_operand.vmem [shape: f32[64,1], index: 2, kind: input, shape index: {}]   ;;  %s678_s3 = inlined_call_operand.vmem [shape: f32[64,47], index: 3, kind: input, shape index: {}]   ;;  %s679_s4 = inlined_call_operand.vmem [shape: f32[2,64], index: 4, kind: input, shape index: {}]   ;;  %s680_s5 = inlined_call_operand.<no memory space> [shape: f32[1,1], index: 5, kind: input, shape index: {}]   ;;  %s681_s6 = inlined_call_operand.vmem [shape: f32[2,1], index: 6, kind: output, shape index: {}]  }
   0x1   :  { %v467_v0 = vld [vmem:[%s675_s0 + $0x4] sm:$0xf]  ;;  %v25_v1 = vld [vmem:[%s675_s0] sm:$0xf]  ;;  %v27_v2 = vld [vmem:[%s676_s1 + $0x8] sm:$0xff]  ;;  %490 = vset.pattern.permute.xlu0 %v495_v5  ;;  %491 = vset.pattern.permute.xlu1 %v495_v5  ;;  %vm429_vm3 = vcmask 377856  }
   0x2   :  { %247 = vrot.lane.b32.xlu1 %v467_v0, %s493_s25  ;;  %36 = vrot.lane.b32.xlu0 %v25_v1, %s494_s26  ;;  %v28_v3 = vld [vmem:[%s676_s1 + $0x10] sm:$0xff]  ;;  %v289_v4 = vld [vmem:[%s677_s2 + $0x28] sm:$0xff]  ;;  %vm438_vm4 = vcmask 1024  }
   0x3   :  { %485 = vmatpush.msk.msra.mxu1 %vm51_vm0, %v25_v1  ;;  %489 = vset.pattern.permute.xlu2 %v495_v5  ;;  %v29_v6 = vld [vmem:[%s676_s1 + $0x18] sm:$0xff]  ;;  %v284_v7 = vld [vmem:[%s677_s2] sm:$0xff]  ;;  %v445_v8 = vld [vmem:[%s676_s1 + $0x28] sm:$0xff] }
   0x4   :  { %455 = vmatmul.msk.f32.vlgmr.msra.gmra.mxu1 %vm38_vm1, %v27_v2  ;;  %v444_v9 = vld [vmem:[%s676_s1 + $0x20] sm:$0xff]  ;;  %v291_v12 = vld [vmem:[%s677_s2 + $0x38] sm:$0xff]  ;;  %v446_v15 = vld [vmem:[%s676_s1 + $0x30] sm:$0xff] }
   0x5   :  { %v288_v13 = vld [vmem:[%s677_s2 + $0x20] sm:$0xff]  ;;  %329 = vperm.xlu2 %489, %v291_v12   ;;  %v290_v19 = vld [vmem:[%s677_s2 + $0x30] sm:$0xff]  ;;  %v459_v21 = vld [vmem:[%s676_s1 + $0x48] sm:$0xff] }
   0x6   :  { %v458_v14 = vld [vmem:[%s676_s1 + $0x40] sm:$0xff]  ;;  %v286_v20 = vld [vmem:[%s677_s2 + $0x10] sm:$0xff]  ;;  %v447_v22 = vld [vmem:[%s676_s1 + $0x38] sm:$0xff] }
   0x7   :  { %v26_v18 = vld [vmem:[%s676_s1] sm:$0xff]  ;;  %v287_v23 = vld [vmem:[%s677_s2 + $0x18] sm:$0xff]  ;;  %v460_v24 = vld [vmem:[%s676_s1 + $0x50] sm:$0xff] }
   0x8   :  { %v285_v25 = vld [vmem:[%s677_s2 + $0x8] sm:$0xff]  ;;  %v461_v26 = vld [vmem:[%s676_s1 + $0x58] sm:$0xff] }
   0xa   :  { %131 = vrot.lane.b32.xlu1 %v25_v1, %s493_s25  ;;  %183 = vrot.lane.b32.xlu0 %v467_v0, %s494_s26 }
   0xc   :  { %456 = vmatmul.msk.f32.gmra.mxu1 %vm38_vm1, %v28_v3 }
   0xd   :  { %324 = vperm.xlu2 %489, %v290_v19  }
  0x12   :  { %319 = vperm.xlu0 %490, %v289_v4   ;;  %314 = vperm.xlu1 %491, %v288_v13  }
  0x14   :  { %457 = vmatmul.msk.f32.gmra.mxu1 %vm38_vm1, %v29_v6 }
  0x15   :  { %309 = vperm.xlu2 %489, %v287_v23  }
  0x1a   :  { %294 = vperm.xlu0 %490, %v284_v7   ;;  %304 = vperm.xlu1 %491, %v286_v20  }
  0x1d   :  { %299 = vperm.xlu2 %489, %v285_v25  }
  0x5f   :  { %v330_v42 = vpop.permute.xlu2 %329 }
  0x67   :  { %v325_v53 = vpop.permute.xlu2 %324 }
  0x6f   :  { %v310_v7 = vpop.permute.xlu2 %309 }
  0x74   :  { %v248_v10 = vpop.permute.xlu1 %247  ;;  %v37_v11 = vpop.permute.xlu0 %36 }
  0x75   :  { %448 = vmatpush.msk.msra.mxu0 %vm51_vm0, %v37_v11  ;;  %484 = vmatpush.msk.msra.mxu3 %vm51_vm0, %v37_v11 }
  0x76   :  { %450 = vmatmul.msk.f32.vlgmr.msra.gmra.mxu3 %vm38_vm1, %v445_v8  ;;  %449 = vmatmul.msk.f32.vlgmr.msra.gmra.mxu0 %vm38_vm1, %v444_v9 }
  0x77   :  { %453 = vmatpush.msk.msrb.mxu0 %vm51_vm0, %v25_v1  ;;  %478 = vmatpush.msk.msrb.mxu1 %vm51_vm0, %v248_v10 }
  0x78   :  { %479 = vmatmul.msk.f32.vlgmr.msrb.gmra.mxu1 %vm38_vm1, %v458_v14 }
  0x79   :  { %473 = vmatpush.msk.msra.mxu0 %vm51_vm0, %v467_v0 }
  0x7c   :  { %v132_v16 = vpop.permute.xlu1 %131  ;;  %v184_v17 = vpop.permute.xlu0 %183 }
  0x7d   :  { %462 = vmatpush.msk.msra.mxu2 %vm51_vm0, %v132_v16  ;;  %468 = vmatpush.msk.msrb.mxu3 %vm51_vm0, %v184_v17 }
  0x7e   :  { %451 = vmatmul.msk.f32.gmra.mxu3 %vm38_vm1, %v446_v15  ;;  %463 = vmatmul.msk.f32.vlgmr.msra.gmra.mxu2 %vm38_vm1, %v458_v14 }
  0x7f   :  { %454 = vmatmul.msk.f32.vlgmr.msrb.gmra.mxu0 %vm38_vm1, %v26_v18 }
  0x80   :  { %480 = vmatmul.msk.f32.gmra.mxu1 %vm38_vm1, %v459_v21 }
  0x81   :  { %v117_v27 = vpop.f32.mrf.mxu1 }
  0x84   :  { %v315_v43 = vpop.permute.xlu1 %314  ;;  %v320_v48 = vpop.permute.xlu0 %319 }
  0x86   :  { %452 = vmatmul.msk.f32.gmra.mxu3 %vm38_vm1, %v447_v22  ;;  %464 = vmatmul.msk.f32.gmra.mxu2 %vm38_vm1, %v459_v21 }
  0x87   :  { %474 = vmatmul.msk.f32.vlgmr.msra.gmra.mxu0 %vm38_vm1, %v26_v18 }
  0x88   :  { %481 = vmatmul.msk.f32.gmra.mxu1 %vm38_vm1, %v460_v24 }
  0x89   :  { %v120_v30 = vpop.f32.mrf.mxu1 }
  0x8c   :  { %v305_v56 = vpop.permute.xlu1 %304  ;;  %v295_v17 = vpop.permute.xlu0 %294 }
  0x8e   :  { %465 = vmatmul.msk.f32.gmra.mxu2 %vm38_vm1, %v460_v24  ;;  %469 = vmatmul.msk.f32.vlgmr.msrb.gmra.mxu3 %vm38_vm1, %v444_v9  ;;  %v300_v24 = vpop.permute.xlu2 %299 }
  0x8f   :  { %475 = vmatmul.msk.f32.gmra.mxu0 %vm38_vm1, %v27_v2 }
  0x90   :  { %482 = vmatmul.msk.f32.gmra.mxu1 %vm38_vm1, %v461_v26 }
  0x91   :  { %v123_v33 = vpop.f32.mrf.mxu1 }
  0x96   :  { %466 = vmatmul.msk.f32.gmra.mxu2 %vm38_vm1, %v461_v26  ;;  %470 = vmatmul.msk.f32.gmra.mxu3 %vm38_vm1, %v445_v8 }
  0x97   :  { %476 = vmatmul.msk.f32.gmra.mxu0 %vm38_vm1, %v28_v3 }
  0x9e   :  { %471 = vmatmul.msk.f32.gmra.mxu3 %vm38_vm1, %v446_v15 }
  0x9f   :  { %477 = vmatmul.msk.f32.gmra.mxu0 %vm38_vm1, %v29_v6 }
  0xa6   :  { %472 = vmatmul.msk.f32.gmra.mxu3 %vm38_vm1, %v447_v22 }
  0xf3   :  { %v71_v28 = vpop.f32.mrf.mxu0 }
  0xf5   :  { %v268_v37 = vpop.f32.mrf.mxu1 }
  0xf9   :  { %v74_v29 = vpop.f32.mrf.mxu3 }
  0xfa   :  { %v118_v20 = vadd.f32 %v117_v27, %v74_v29 }
  0xfc   :  { %v114_v32 = vpop.f32.mrf.mxu0 }
  0xfd   :  { %v271_v41 = vpop.f32.mrf.mxu1  ;;  %v115_v8 = vadd.f32 %v114_v32, %v71_v28  ;;  %v395_v32 = vld [vmem:[%s678_s3 + $0x38] sm:$0xff] }
 0x101   :  { %v77_v31 = vpop.f32.mrf.mxu3  ;;  %v164_v34 = vpop.f32.mrf.mxu2 }
 0x102   :  { %v121_v50 = vadd.f32 %v120_v30, %v77_v31  ;;  %v176_v13 = vadd.f32 %v164_v34, %v115_v8 }
 0x104   :  { %v235_v36 = vpop.f32.mrf.mxu0  ;;  %v332_v18 = vadd.f32 %v295_v17, %v176_v13 }
 0x105   :  { %v274_v52 = vpop.f32.mrf.mxu1 }
 0x106   :  { %v340_v21 = vmax.f32 %v332_v18, 0.0 }
 0x109   :  { %v80_v35 = vpop.f32.mrf.mxu3  ;;  %v167_v38 = vpop.f32.mrf.mxu2 }
 0x10a   :  { %v124_v62 = vadd.f32 %v123_v33, %v80_v35  ;;  %v177_v22 = vadd.f32 %v167_v38, %v118_v20  ;;  %v394_v33 = vld [vmem:[%s678_s3 + $0x30] sm:$0xff] }
 0x10c   :  { %v238_v40 = vpop.f32.mrf.mxu0  ;;  %v333_v25 = vadd.f32 %v300_v24, %v177_v22 }
 0x10d   :  { %v277_v5 = vpop.f32.mrf.mxu1 }
 0x10e   :  { %v341_v26 = vmax.f32 %v333_v25, 0.0 }
 0x111   :  { %v204_v39 = vpop.f32.mrf.mxu3  ;;  %v170_v46 = vpop.f32.mrf.mxu2 }
 0x112   :  { %v178_v54 = vadd.f32 %v170_v46, %v121_v50  ;;  %v236_v9 = vadd.f32 %v235_v36, %v204_v39 }
 0x114   :  { %v241_v49 = vpop.f32.mrf.mxu0  ;;  %v632_v59 = vadd.f32 %v305_v56, %v178_v54  ;;  %v280_v14 = vadd.f32 %v268_v37, %v236_v9  ;;  %v393_v37 = vld [vmem:[%s678_s3 + $0x28] sm:$0xff]  ;;  %v388_v56 = vld [vmem:[%s678_s3] sm:$0xff] }
 0x116   :  { %v342_v1 = vmax.f32 %v632_v59, 0.0  ;;  %v336_v19 = vadd.f32 %v315_v43, %v280_v14  ;;  %v404_v59 = vld [vmem:[%s679_s4] sm:$0x3] }
 0x118   :  { %v344_v23 = vmax.f32 %v336_v19, 0.0 }
 0x119   :  { %v207_v44 = vpop.f32.mrf.mxu3  ;;  %v173_v61 = vpop.f32.mrf.mxu2 }
 0x11a   :  { %v239_v45 = vadd.f32 %v238_v40, %v207_v44  ;;  %v179_v2 = vadd.f32 %v173_v61, %v124_v62 }
 0x11c   :  { %v281_v47 = vadd.f32 %v271_v41, %v239_v45  ;;  %v244_v0 = vpop.f32.mrf.mxu0  ;;  %v335_v10 = vadd.f32 %v310_v7, %v179_v2  ;;  %v391_v45 = vld [vmem:[%s678_s3 + $0x18] sm:$0xff] }
 0x11e   :  { %v337_v51 = vadd.f32 %v320_v48, %v281_v47  ;;  %v343_v15 = vmax.f32 %v335_v10, 0.0  ;;  %v390_v48 = vld [vmem:[%s678_s3 + $0x10] sm:$0xff] }
 0x120   :  { %v345_v55 = vmax.f32 %v337_v51, 0.0 }
 0x121   :  { %v210_v57 = vpop.f32.mrf.mxu3 }
 0x122   :  { %v242_v58 = vadd.f32 %v241_v49, %v210_v57  ;;  %366 = vrot.lane.b32.xlu0 %v345_v55, %s494_s26 }
 0x124   :  { %v282_v60 = vadd.f32 %v274_v52, %v242_v58 }
 0x126   :  { %v338_v63 = vadd.f32 %v325_v53, %v282_v60  ;;  %v389_v53 = vld [vmem:[%s678_s3 + $0x8] sm:$0xff]  ;;  %v11_v60 = vstv %s680_s5 }
 0x127   :  { %12 = vst [vmem:[#allocation2] sm:$0x1] %v11_v60 }
 0x128   :  { %v346_v3 = vmax.f32 %v338_v63, 0.0 }
 0x129   :  { %v213_v4 = vpop.f32.mrf.mxu3 }
 0x12a   :  { %v245_v6 = vadd.f32 %v244_v0, %v213_v4  ;;  %368 = vrot.lane.b32.xlu2 %v346_v3, %s494_s26  ;;  %360 = vrot.lane.b32.xlu0 %v342_v1, %s494_s26 }
 0x12c   :  { %v283_v11 = vadd.f32 %v277_v5, %v245_v6 }
 0x12e   :  { %v339_v12 = vadd.f32 %v330_v42, %v283_v11  ;;  %v392_v42 = vld [vmem:[%s678_s3 + $0x20] sm:$0xff] }
 0x12f   :  { %v492_v63 = vld [vmem:[#allocation2] ss:$0 sm:$0xff] }
 0x130   :  { %v347_v16 = vmax.f32 %v339_v12, 0.0 }
 0x132   :  { %370 = vrot.lane.b32.xlu1 %v347_v16, %s494_s26  ;;  %362 = vrot.lane.b32.xlu2 %v343_v15, %s494_s26 }
 0x13a   :  { %364 = vrot.lane.b32.xlu1 %v344_v23, %s494_s26  ;;  %356 = vrot.lane.b32.xlu2 %v340_v21, %s494_s26 }
 0x142   :  { %358 = vrot.lane.b32.xlu1 %v341_v26, %s494_s26 }
 0x184   :  { %v369_v28 = vpop.permute.xlu2 %368 }
 0x185   :  { %v386_v27 = vmax.f32 %v346_v3, %v369_v28 }
 0x187   :  { %v402_v38 = vmul.f32 %v394_v33, %v386_v27 }
 0x18c   :  { %v363_v36 = vpop.permute.xlu2 %362 }
 0x18d   :  { %v383_v43 = vmax.f32 %v343_v15, %v363_v36 }
 0x18f   :  { %v399_v49 = vmul.f32 %v391_v45, %v383_v43 }
 0x194   :  { %v367_v30 = vpop.permute.xlu0 %366  ;;  %v357_v50 = vpop.permute.xlu2 %356 }
 0x195   :  { %v385_v34 = vmax.f32 %v345_v55, %v367_v30  ;;  %v380_v54 = vmax.f32 %v340_v21, %v357_v50 }
 0x197   :  { %v401_v39 = vmul.f32 %v393_v37, %v385_v34  ;;  %v396_v58 = vmul.f32 %v388_v56, %v380_v54 }
 0x19c   :  { %v361_v40 = vpop.permute.xlu0 %360 }
 0x19d   :  { %v382_v46 = vmax.f32 %v342_v1, %v361_v40 }
 0x19f   :  { %v398_v51 = vmul.f32 %v390_v48, %v382_v46 }
 0x1a4   :  { %v371_v31 = vpop.permute.xlu1 %370 }
 0x1a5   :  { %v387_v29 = vmax.f32 %v347_v16, %v371_v31 }
 0x1a7   :  { %v403_v35 = vmul.f32 %v395_v32, %v387_v29 }
 0x1a9   :  { %417 = vmatpush.msrb.mxu2 %v403_v35 }
 0x1ab   :  { %418 = vmatpush.msrb.mxu2 %v402_v38 }
 0x1ac   :  { %v365_v41 = vpop.permute.xlu1 %364 }
 0x1ad   :  { %v384_v44 = vmax.f32 %v344_v23, %v365_v41  ;;  %419 = vmatpush.msrb.mxu2 %v401_v39 }
 0x1af   :  { %v400_v47 = vmul.f32 %v392_v42, %v384_v44 }
 0x1b1   :  { %420 = vmatpush.msrb.mxu2 %v400_v47 }
 0x1b3   :  { %421 = vmatpush.msrb.mxu2 %v399_v49 }
 0x1b4   :  { %v359_v52 = vpop.permute.xlu1 %358 }
 0x1b5   :  { %v381_v55 = vmax.f32 %v341_v26, %v359_v52  ;;  %422 = vmatpush.msrb.mxu2 %v398_v51 }
 0x1b7   :  { %v397_v57 = vmul.f32 %v389_v53, %v381_v55 }
 0x1b9   :  { %423 = vmatpush.msrb.mxu2 %v397_v57 }
 0x1bb   :  { %424 = vmatpush.msrb.mxu2 %v396_v58 }
 0x1bc   :  { %483 = vmatmul.msk.f32.vlgmr.msrb.gmra.mxu2 %vm405_vm2, %v404_v59 }
 0x23f   :  { %v426_v61 = vpop.f32.mrf.mxu2 }
 0x240   :  { %v430_v62 = vsel %vm429_vm3, %v426_v61, 0.0 }
 0x241   :  { %431 = vadd.xlane.f32.xlu0 %v430_v62 }
 0x2b4   :  { %v432_v0 = vpop.xlane.xlu0 %431 }
 0x2b5   :  { %v437_v1 = vadd.f32 %v492_v63, %v432_v0 }
 0x2b7   :  { %439 = vst.msk [vmem:[%s681_s6] sm:$0x3] %vm438_vm4, %v437_v1 }

</bundles_post_ra>
